<compile_context>
chip_gen: v7x
topology: tpu7x:2x2x1
jax: 0.10.0
libtpu: 0.0.40
codegen_flags: <defaults>
</compile_context>

<pallas_src>
import functools

import jax
import jax.numpy as jnp
from jax.experimental import pallas as pl
from jax.experimental.pallas import tpu as pltpu

_HALF_LOG_2PI = 0.9189385332046727  # 0.5 * log(2 * pi)


def _round_up(x, m):
    return ((x + m - 1) // m) * m


def _mdn_nll_kernel(params_ref, y_ref, nll_ref, *, n_mixtures, out_features):
    """Per-sample NLL for one batch tile.

    params_ref: (TILE_B, 2*K*F + K)  cols = [mus (K*F) | sigmas (K*F) | pi (K)]
    y_ref:      (TILE_B, F)
    nll_ref:    (1, TILE_B)
    """
    K, F = n_mixtures, out_features
    KF = K * F

    # Single in-kernel transpose to a lane-dense layout (batch on lanes);
    # XLU work, overlapped with the next tile's DMA by the pipeline.
    pt = jnp.transpose(params_ref[...].astype(jnp.float32))          # (P, TB)
    y = jnp.transpose(y_ref[...].astype(jnp.float32))                # (F, TB)

    # log-softmax over the K mixture logits (sublane axis -> per-lane).
    pi = pt[2 * KF:2 * KF + K, :]                                    # (K, TB)
    pi_max = jnp.max(pi, axis=0, keepdims=True)                      # (1, TB)
    log_z = pi_max + jnp.log(jnp.sum(jnp.exp(pi - pi_max), axis=0, keepdims=True))
    log_pi = pi - log_z                                              # (K, TB)

    # Online (flash-style) logsumexp over mixtures: only m/acc stay live
    # across iterations, independent of K.  z_k = log_pi_k - 0.5*((y-mu)/sig)^2
    # and the -log(sigma_k) term is applied post-exp as *inv_sigma_k.
    # NOTE: mu_k / sigma_k sublane slices stay (8,128)-aligned when F % 8 == 0.
    m = None
    acc = None
    for k in range(K):                                               # static unroll
        mu = pt[k * F:(k + 1) * F, :]                                # (F, TB)
        sigma = pt[KF + k * F:KF + (k + 1) * F, :]                   # (F, TB)
        inv_sigma = pl.reciprocal(sigma, approx=False)               # exact 1/sigma
        t = (y - mu) * inv_sigma
        z = log_pi[k:k + 1, :] - 0.5 * (t * t)                       # (F, TB)
        if k == 0:
            m = z
            acc = inv_sigma                                          # exp(z - m) == 1
        else:
            m_new = jnp.maximum(m, z)
            acc = acc * jnp.exp(m - m_new) + inv_sigma * jnp.exp(z - m_new)
            m = m_new

    log_prob = m + jnp.log(acc)                                      # (F, TB), minus const

    # NLL per sample: sum over out_features (sublane axis, per-lane); re-add the
    # mixture-independent Gaussian normalization constant once per feature.
    nll_ref[...] = (F * _HALF_LOG_2PI
                    - jnp.sum(log_prob, axis=0, keepdims=True))      # (1, TB)


@functools.partial(jax.jit, static_argnames=("out_features", "n_mixtures", "tile_b"))
def mdn_loss(mdn_params, y_true, *, out_features, n_mixtures, tile_b=2048):
    K, F = n_mixtures, out_features
    KF = K * F
    P = 2 * KF + K
    batch = y_true.shape[0]
    y2 = y_true.reshape(batch, -1)                                   # (B, F), no transpose
    assert mdn_params.shape == (batch, P)
    assert y2.shape == (batch, F)

    # Batch tile (becomes the lane axis after the in-kernel transpose):
    #   * single tile for small batches,
    #   * otherwise a multiple of 128 lanes, capped so the grid has >= 2
    #     "parallel" steps (v7x megacore shares HBM across 2 TensorCores).
    tile_cap = max(128, (tile_b // 128) * 128)
    if batch <= 256:
        tb = batch
    else:
        tb = min(tile_cap, _round_up(pl.cdiv(batch, 2), 128))
    grid = pl.cdiv(batch, tb)                                        # edge block may read OOB

    kernel = functools.partial(_mdn_nll_kernel, n_mixtures=K, out_features=F)
    itemsize = jnp.dtype(mdn_params.dtype).itemsize
    cost = pl.CostEstimate(
        flops=int(10 * K * F * batch),
        transcendentals=int((3 * K + 2) * F * batch),
        bytes_accessed=int(itemsize * (P + F) * batch + 4 * batch),
    )

    nll = pl.pallas_call(
        kernel,
        out_shape=jax.ShapeDtypeStruct((1, batch), jnp.float32),
        grid=(grid,),
        in_specs=[
            pl.BlockSpec((tb, P), lambda i: (i, 0)),                 # contiguous params slab
            pl.BlockSpec((tb, F), lambda i: (i, 0)),                 # contiguous y slab
        ],
        out_specs=pl.BlockSpec((1, tb), lambda i: (0, i)),           # per-sample NLL, lane-dense
        compiler_params=pltpu.CompilerParams(
            dimension_semantics=("parallel",),                       # tiles are independent
        ),
        cost_estimate=cost,
    )(mdn_params, y2)

    # Mean over the true batch only (OOB edge-block lanes are never written).
    return jnp.sum(nll) / jnp.float32(batch)


def _mdn_loss_ref(mdn_params, y_true, *, out_features, n_mixtures):
    """Pure-JAX reference mirroring the PyTorch forward."""
    batch = y_true.shape[0]
    y = y_true.reshape(batch, -1)
    mus = mdn_params[:, :n_mixtures * out_features].reshape(batch, n_mixtures, out_features)
    sigmas = mdn_params[:, n_mixtures * out_features:2 * n_mixtures * out_features].reshape(
        batch, n_mixtures, out_features)
    pi_logits = mdn_params[:, -n_mixtures:]
    log_pi = jax.nn.log_softmax(pi_logits, axis=-1)                  # (B, K)
    total = jnp.zeros((batch,), jnp.float32)
    for i in range(out_features):
        mu = mus[:, :, i]
        sigma = sigmas[:, :, i]
        log_norm = (-0.5 * ((y[:, i:i + 1] - mu) / sigma) ** 2
                    - jnp.log(sigma) - _HALF_LOG_2PI)
        lp = jax.scipy.special.logsumexp(log_pi + log_norm, axis=-1)
        total = total + (-lp)
    return jnp.mean(total)


def _make_inputs(key, batch, out_features, n_mixtures):
    k_mu, k_sig, k_pi, k_y = jax.random.split(key, 4)
    mus_raw = jax.random.normal(k_mu, (batch, n_mixtures * out_features), jnp.float32)
    # sigmas must be positive to be a valid Normal scale (input construction only)
    sigmas_raw = jax.nn.softplus(
        jax.random.normal(k_sig, (batch, n_mixtures * out_features), jnp.float32)) + 0.1
    pi_raw = jax.random.normal(k_pi, (batch, n_mixtures), jnp.float32)
    mdn_params = jnp.concatenate([mus_raw, sigmas_raw, pi_raw], axis=-1)
    y_true = jax.random.normal(k_y, (batch, out_features), jnp.float32)
    return mdn_params, y_true


if __name__ == "__main__":
    out_features = 8
    n_mixtures = 4
    key = jax.random.PRNGKey(0)
    k1, k2 = jax.random.split(key)

    # Small single-tile case (matches the module's typical tiny shapes).
    mdn_params, y_true = _make_inputs(k1, 8, out_features, n_mixtures)     # (8, 68), (8, 8)
    loss = mdn_loss(mdn_params, y_true, out_features=out_features, n_mixtures=n_mixtures)
    loss = jax.block_until_ready(loss)
    ref = _mdn_loss_ref(mdn_params, y_true, out_features=out_features, n_mixtures=n_mixtures)
    assert jnp.allclose(loss, ref, rtol=1e-5, atol=1e-5), (loss, ref)

    # Multi-tile case with a non-divisible batch: exercises the >=2 "parallel"
    # grid steps and the masked OOB edge block (no wrapper padding).
    mdn_params2, y_true2 = _make_inputs(k2, 300, out_features, n_mixtures)  # (300, 68), (300, 8)
    loss2 = mdn_loss(mdn_params2, y_true2, out_features=out_features, n_mixtures=n_mixtures)
    loss2 = jax.block_until_ready(loss2)
    ref2 = _mdn_loss_ref(mdn_params2, y_true2, out_features=out_features, n_mixtures=n_mixtures)
    assert jnp.allclose(loss2, ref2, rtol=1e-5, atol=1e-5), (loss2, ref2)

    print("KERNEL_OK")
</pallas_src>

<mosaic_0001>
module attributes {stable_mosaic.version = 11 : i64} {
  func.func @_mdn_nll_kernel(%arg0: i32, %arg1: memref<8x68xf32, #tpu.memory_space<vmem>>, %arg2: memref<8x8xf32, #tpu.memory_space<vmem>>, %arg3: memref<1x8xf32, #tpu.memory_space<vmem>>) attributes {dimension_semantics = [#tpu.dimension_semantics<parallel>], iteration_bounds = array<i64: 1>, scalar_prefetch = 0 : i64, scratch_operands = 0 : i64, tpu.core_type = #tpu.core_type<tc>, window_params = [{transform_indices = @transform_0, window_bounds = array<i64: 8, 68>}, {transform_indices = @transform_1, window_bounds = array<i64: 8, 8>}, {transform_indices = @transform_2, window_bounds = array<i64: 1, 8>}]} {
    %c0 = arith.constant 0 : index
    %c0_0 = arith.constant 0 : index
    %0 = vector.load %arg1[%c0, %c0_0] : memref<8x68xf32, #tpu.memory_space<vmem>>, vector<8x68xf32>
    %1 = tpu.transpose %0, [1, 0] : vector<8x68xf32> -> vector<68x8xf32>
    %c0_1 = arith.constant 0 : index
    %c0_2 = arith.constant 0 : index
    %2 = vector.load %arg2[%c0_1, %c0_2] : memref<8x8xf32, #tpu.memory_space<vmem>>, vector<8x8xf32>
    %3 = tpu.transpose %2, [1, 0] : vector<8x8xf32> -> vector<8x8xf32>
    %4 = vector.extract_strided_slice %1 {offsets = [64, 0], sizes = [4, 8], strides = [1, 1]} : vector<68x8xf32> to vector<4x8xf32>
    %cst = arith.constant dense<0xFF800000> : vector<8xf32>
    %5 = vector.multi_reduction <maximumf>, %4, %cst [0] : vector<4x8xf32> to vector<8xf32>
    %6 = vector.shape_cast %5 : vector<8xf32> to vector<1x8xf32>
    %7 = vector.broadcast %6 : vector<1x8xf32> to vector<4x8xf32>
    %8 = arith.subf %4, %7 : vector<4x8xf32>
    %9 = math.exp %8 : vector<4x8xf32>
    %cst_3 = arith.constant dense<0.000000e+00> : vector<8xf32>
    %10 = vector.multi_reduction <add>, %9, %cst_3 [0] : vector<4x8xf32> to vector<8xf32>
    %11 = vector.shape_cast %10 : vector<8xf32> to vector<1x8xf32>
    %12 = math.log %11 : vector<1x8xf32>
    %13 = arith.addf %6, %12 : vector<1x8xf32>
    %14 = vector.broadcast %13 : vector<1x8xf32> to vector<4x8xf32>
    %15 = arith.subf %4, %14 : vector<4x8xf32>
    %16 = vector.extract_strided_slice %1 {offsets = [0, 0], sizes = [8, 8], strides = [1, 1]} : vector<68x8xf32> to vector<8x8xf32>
    %17 = vector.extract_strided_slice %1 {offsets = [32, 0], sizes = [8, 8], strides = [1, 1]} : vector<68x8xf32> to vector<8x8xf32>
    %18 = tpu.reciprocal %17 : vector<8x8xf32> -> vector<8x8xf32>
    %19 = arith.subf %3, %16 : vector<8x8xf32>
    %20 = arith.mulf %19, %18 : vector<8x8xf32>
    %21 = vector.extract_strided_slice %15 {offsets = [0, 0], sizes = [1, 8], strides = [1, 1]} : vector<4x8xf32> to vector<1x8xf32>
    %22 = arith.mulf %20, %20 : vector<8x8xf32>
    %cst_4 = arith.constant 5.000000e-01 : f32
    %23 = vector.broadcast %cst_4 : f32 to vector<8x8xf32>
    %24 = arith.mulf %23, %22 : vector<8x8xf32>
    %25 = vector.broadcast %21 : vector<1x8xf32> to vector<8x8xf32>
    %26 = arith.subf %25, %24 : vector<8x8xf32>
    %27 = vector.extract_strided_slice %1 {offsets = [8, 0], sizes = [8, 8], strides = [1, 1]} : vector<68x8xf32> to vector<8x8xf32>
    %28 = vector.extract_strided_slice %1 {offsets = [40, 0], sizes = [8, 8], strides = [1, 1]} : vector<68x8xf32> to vector<8x8xf32>
    %29 = tpu.reciprocal %28 : vector<8x8xf32> -> vector<8x8xf32>
    %30 = arith.subf %3, %27 : vector<8x8xf32>
    %31 = arith.mulf %30, %29 : vector<8x8xf32>
    %32 = vector.extract_strided_slice %15 {offsets = [1, 0], sizes = [1, 8], strides = [1, 1]} : vector<4x8xf32> to vector<1x8xf32>
    %33 = arith.mulf %31, %31 : vector<8x8xf32>
    %cst_5 = arith.constant 5.000000e-01 : f32
    %34 = vector.broadcast %cst_5 : f32 to vector<8x8xf32>
    %35 = arith.mulf %34, %33 : vector<8x8xf32>
    %36 = vector.broadcast %32 : vector<1x8xf32> to vector<8x8xf32>
    %37 = arith.subf %36, %35 : vector<8x8xf32>
    %38 = arith.maximumf %26, %37 : vector<8x8xf32>
    %39 = arith.subf %26, %38 : vector<8x8xf32>
    %40 = math.exp %39 : vector<8x8xf32>
    %41 = arith.mulf %18, %40 : vector<8x8xf32>
    %42 = arith.subf %37, %38 : vector<8x8xf32>
    %43 = math.exp %42 : vector<8x8xf32>
    %44 = arith.mulf %29, %43 : vector<8x8xf32>
    %45 = arith.addf %41, %44 : vector<8x8xf32>
    %46 = vector.extract_strided_slice %1 {offsets = [16, 0], sizes = [8, 8], strides = [1, 1]} : vector<68x8xf32> to vector<8x8xf32>
    %47 = vector.extract_strided_slice %1 {offsets = [48, 0], sizes = [8, 8], strides = [1, 1]} : vector<68x8xf32> to vector<8x8xf32>
    %48 = tpu.reciprocal %47 : vector<8x8xf32> -> vector<8x8xf32>
    %49 = arith.subf %3, %46 : vector<8x8xf32>
    %50 = arith.mulf %49, %48 : vector<8x8xf32>
    %51 = vector.extract_strided_slice %15 {offsets = [2, 0], sizes = [1, 8], strides = [1, 1]} : vector<4x8xf32> to vector<1x8xf32>
    %52 = arith.mulf %50, %50 : vector<8x8xf32>
    %cst_6 = arith.constant 5.000000e-01 : f32
    %53 = vector.broadcast %cst_6 : f32 to vector<8x8xf32>
    %54 = arith.mulf %53, %52 : vector<8x8xf32>
    %55 = vector.broadcast %51 : vector<1x8xf32> to vector<8x8xf32>
    %56 = arith.subf %55, %54 : vector<8x8xf32>
    %57 = arith.maximumf %38, %56 : vector<8x8xf32>
    %58 = arith.subf %38, %57 : vector<8x8xf32>
    %59 = math.exp %58 : vector<8x8xf32>
    %60 = arith.mulf %45, %59 : vector<8x8xf32>
    %61 = arith.subf %56, %57 : vector<8x8xf32>
    %62 = math.exp %61 : vector<8x8xf32>
    %63 = arith.mulf %48, %62 : vector<8x8xf32>
    %64 = arith.addf %60, %63 : vector<8x8xf32>
    %65 = vector.extract_strided_slice %1 {offsets = [24, 0], sizes = [8, 8], strides = [1, 1]} : vector<68x8xf32> to vector<8x8xf32>
    %66 = vector.extract_strided_slice %1 {offsets = [56, 0], sizes = [8, 8], strides = [1, 1]} : vector<68x8xf32> to vector<8x8xf32>
    %67 = tpu.reciprocal %66 : vector<8x8xf32> -> vector<8x8xf32>
    %68 = arith.subf %3, %65 : vector<8x8xf32>
    %69 = arith.mulf %68, %67 : vector<8x8xf32>
    %70 = vector.extract_strided_slice %15 {offsets = [3, 0], sizes = [1, 8], strides = [1, 1]} : vector<4x8xf32> to vector<1x8xf32>
    %71 = arith.mulf %69, %69 : vector<8x8xf32>
    %cst_7 = arith.constant 5.000000e-01 : f32
    %72 = vector.broadcast %cst_7 : f32 to vector<8x8xf32>
    %73 = arith.mulf %72, %71 : vector<8x8xf32>
    %74 = vector.broadcast %70 : vector<1x8xf32> to vector<8x8xf32>
    %75 = arith.subf %74, %73 : vector<8x8xf32>
    %76 = arith.maximumf %57, %75 : vector<8x8xf32>
    %77 = arith.subf %57, %76 : vector<8x8xf32>
    %78 = math.exp %77 : vector<8x8xf32>
    %79 = arith.mulf %64, %78 : vector<8x8xf32>
    %80 = arith.subf %75, %76 : vector<8x8xf32>
    %81 = math.exp %80 : vector<8x8xf32>
    %82 = arith.mulf %67, %81 : vector<8x8xf32>
    %83 = arith.addf %79, %82 : vector<8x8xf32>
    %84 = math.log %83 : vector<8x8xf32>
    %85 = arith.addf %76, %84 : vector<8x8xf32>
    %cst_8 = arith.constant dense<0.000000e+00> : vector<8xf32>
    %86 = vector.multi_reduction <add>, %85, %cst_8 [0] : vector<8x8xf32> to vector<8xf32>
    %87 = vector.shape_cast %86 : vector<8xf32> to vector<1x8xf32>
    %cst_9 = arith.constant 7.35150814 : f32
    %88 = vector.broadcast %cst_9 : f32 to vector<1x8xf32>
    %89 = arith.subf %88, %87 : vector<1x8xf32>
    %c0_10 = arith.constant 0 : index
    %c0_11 = arith.constant 0 : index
    %90 = vector.load %arg3[%c0_10, %c0_11] : memref<1x8xf32, #tpu.memory_space<vmem>>, vector<1x8xf32>
    tpu.vector_store %arg3[%c0_10, %c0_11], %89 {strides = array<i32>} : memref<1x8xf32, #tpu.memory_space<vmem>>, vector<1x8xf32>,
    return
  }
  func.func @transform_0(%arg0: i32) -> (i32, i32) {
    %c0_i32 = arith.constant 0 : i32
    %c0_i32_0 = arith.constant 0 : i32
    return %arg0, %c0_i32 : i32, i32
  }
  func.func @transform_1(%arg0: i32) -> (i32, i32) {
    %c0_i32 = arith.constant 0 : i32
    %c0_i32_0 = arith.constant 0 : i32
    return %arg0, %c0_i32 : i32, i32
  }
  func.func @transform_2(%arg0: i32) -> (i32, i32) {
    %c0_i32 = arith.constant 0 : i32
    %c0_i32_0 = arith.constant 0 : i32
    return %c0_i32, %arg0 : i32, i32
  }
}

</mosaic_0001>

<bundles_post_ra>
// kernel: mdn_loss.1
= control target key start
LH: loop header
LB: loop body
LE: loop exit
PB: predicated region body
PF: predicated region fallthrough
CT: control target
= control target key end

     0   :  { %7 = vsyncpa [#allocation3], 0  ;;  %s334_s0 = inlined_call_operand.hbm [shape: f32[8,68], index: 0, kind: input, shape index: {}]   ;;  %s335_s1 = inlined_call_operand.hbm [shape: f32[8,8], index: 1, kind: input, shape index: {}]   ;;  %s336_s2 = inlined_call_operand.vmem [shape: f32[1,8], index: 2, kind: output, shape index: {}]  }
   0x1   :  { %8 = vsyncpa [#allocation5], 0  ;;  %s290_s9 = smov [#allocation2]   ;;  %s291_s11 = smov [#allocation4]  }
   0x2   :  { %s15_s10 = sshll.u32 %s290_s9, 4  ;;  %s25_s12 = sshll.u32 %s291_s11, 4  ;;  %s16_s10 = int_to_ptr.vmem [resolvable:$true] %s15_s10  ;;  %s26_s12 = int_to_ptr.vmem [resolvable:$true] %s25_s12 }
   0x3   :  { %s242_s15 = scalar_lea.hbm %s334_s0, 128 }
   0x4   :  { %p243_p0 = scmp.ne.s32.totalorder %s334_s0, %s242_s15  ;;  %p246_p1 = scmp.lt.u32.totalorder %s242_s15, %s334_s0 }
   0x6   :  { %p248_p2 = pnand %p246_p1, %p243_p0 }
   0x8   :  { %251 = shalt.err (!%p248_p2)
}
   0x9   :  { %s252_s20 = scalar_lea.vmem %s16_s10, 128  ;;  %p257_p4 = scmp.lt.s32.totalorder %s16_s10, %s16_s10 }
   0xa   :  { %p253_p3 = scmp.ne.s32.totalorder %s16_s10, %s252_s20  ;;  %p258_p5 = scmp.lt.s32.totalorder %s252_s20, %s252_s20 }
   0xc   :  { %p259_p6 = por %p258_p5, %p257_p4 }
   0xe   :  { %p260_p7 = pnand %p259_p6, %p253_p3 }
  0x10   :  { %263 = shalt.err (!%p260_p7)
}
  0x11   :  { %18 = dma.hbm_to_vmem [thread:$0]  %s334_s0, 128, %s16_s10, [#allocation3]  }
  0x12   :  { %s264_s25 = scalar_lea.hbm %s335_s1, 128 }
  0x13   :  { %p265_p8 = scmp.ne.s32.totalorder %s335_s1, %s264_s25  ;;  %p268_p9 = scmp.lt.u32.totalorder %s264_s25, %s335_s1 }
  0x15   :  { %p270_p10 = pnand %p268_p9, %p265_p8 }
  0x17   :  { %273 = shalt.err (!%p270_p10)
}
  0x18   :  { %s274_s30 = scalar_lea.vmem %s26_s12, 128  ;;  %p279_p12 = scmp.lt.s32.totalorder %s26_s12, %s26_s12 }
  0x19   :  { %p275_p11 = scmp.ne.s32.totalorder %s26_s12, %s274_s30  ;;  %p280_p13 = scmp.lt.s32.totalorder %s274_s30, %s274_s30 }
  0x1b   :  { %p281_p0 = por %p280_p13, %p279_p12 }
  0x1d   :  { %p282_p1 = pnand %p281_p0, %p275_p11 }
  0x1f   :  { %285 = shalt.err (!%p282_p1)
}
  0x20   :  { %28 = dma.hbm_to_vmem [thread:$0]  %s335_s1, 128, %s26_s12, [#allocation5]  }
  0x21   :  { %286 = dma.done.wait [#allocation3], 128  }
  0x22   :  { %287 = vsyncadd [#allocation3], 4294967168 }
  0x23   :  { %288 = dma.done.wait [#allocation5], 128  }
  0x24   :  { %289 = vsyncadd [#allocation5], 4294967168  ;;  %v35_v0 = vld [vmem:[#allocation2] sm:$0xff]  ;;  %v68_v1 = vld [vmem:[#allocation4] sm:$0xff]  ;;  %vm101_vm0 = vcmask 60416   ;;  %v128_v29 = vlaneseq  ;;  %vm196_vm1 = vcmask 64512  }
  0x25   :  { %36 = vxpose.xlu0.b32.start.end [1/1] (short) (narrow) %v35_v0, 72  ;;  %vm205_vm2 = vcmask 57344  }
  0x26   :  { %v129_v35 = vshrl.u32 %v128_v29, 7 }
  0x28   :  { %v130_v44 = vsub.s32 0, %v129_v35  ;;  %v140_v47 = vsub.s32 1, %v129_v35  ;;  %v160_v48 = vsub.s32 2, %v129_v35  ;;  %v180_v53 = vsub.s32 3, %v129_v35 }
  0x46   :  { %69 = vxpose.xlu0.b32.start.end [1/1] (short) (narrow) %v68_v1, 8 }
  0xa5   :  { %v52_v2 = vpop.trf.xlu0 }
  0xa9   :  { %v53_v3 = vpop.trf.xlu0 }
  0xad   :  { %v54_v4 = vpop.trf.xlu0 }
  0xb1   :  { %v55_v5 = vpop.trf.xlu0 }
  0xb5   :  { %v56_v6 = vpop.trf.xlu0 }
  0xb9   :  { %v57_v7 = vpop.trf.xlu0 }
  0xbd   :  { %v58_v8 = vpop.trf.xlu0 }
  0xc1   :  { %v59_v9 = vpop.trf.xlu0 }
  0xc5   :  { %v60_v10 = vpop.trf.xlu0 }
  0xc6   :  { %v102_v11 = vsel %vm101_vm0, %v60_v10, -inf }
  0xc7   :  { %v103_v12 = vrot.slane %v102_v11, 4 }
  0xc9   :  { %v104_v13 = vmax.f32 %v102_v11, %v103_v12  ;;  %v85_v28 = vpop.trf.xlu0 }
  0xca   :  { %v124_v30 = vsub.f32 %v85_v28, %v52_v2  ;;  %v134_v31 = vsub.f32 %v85_v28, %v53_v3  ;;  %v154_v33 = vsub.f32 %v85_v28, %v54_v4  ;;  %v174_v40 = vsub.f32 %v85_v28, %v55_v5 }
  0xcb   :  { %v105_v14 = vrot.slane %v104_v13, 2 }
  0xcd   :  { %v106_v15 = vmax.f32 %v104_v13, %v105_v14 }
  0xcf   :  { %v107_v16 = vrot.slane %v106_v15, 1 }
  0xd1   :  { %v108_v17 = vmax.f32 %v106_v15, %v107_v16 }
  0xd3   :  { %v109_v18 = vsub.f32 %v60_v10, %v108_v17 }
  0xd5   :  { %v110_v19 = vmul.f32 1.442695, %v109_v18 }
  0xd7   :  { %216 = vpow2.f32 %v110_v19 }
  0xd8   :  { %218 = vrcp.f32 %v56_v6 }
  0xd9   :  { %220 = vrcp.f32 %v57_v7 }
  0xda   :  { %222 = vrcp.f32 %v58_v8 }
  0xe1   :  { %v217_v20 = vpop.eup %216 }
  0xe2   :  { %v112_v21 = vsel %vm101_vm0, %v217_v20, 0.0  ;;  %v219_v32 = vpop.eup %218 }
  0xe3   :  { %v113_v22 = vrot.slane %v112_v21, 4  ;;  %v221_v34 = vpop.eup %220  ;;  %v125_v36 = vmul.f32 %v219_v32, %v124_v30 }
  0xe4   :  { %v223_v37 = vpop.eup %222  ;;  %v135_v38 = vmul.f32 %v221_v34, %v134_v31 }
  0xe5   :  { %v114_v23 = vadd.f32 %v113_v22, %v112_v21  ;;  %v155_v43 = vmul.f32 %v223_v37, %v154_v33  ;;  %v126_v45 = vmul.f32 %v125_v36, %v125_v36 }
  0xe6   :  { %v136_v49 = vmul.f32 %v135_v38, %v135_v38 }
  0xe7   :  { %v115_v24 = vrot.slane %v114_v23, 2  ;;  %v156_v52 = vmul.f32 %v155_v43, %v155_v43  ;;  %v127_v54 = vmul.f32 0.5, %v126_v45 }
  0xe8   :  { %v137_v58 = vmul.f32 0.5, %v136_v49 }
  0xe9   :  { %v116_v25 = vadd.f32 %v115_v24, %v114_v23  ;;  %v157_v62 = vmul.f32 0.5, %v156_v52 }
  0xeb   :  { %v117_v26 = vrot.slane %v116_v25, 1 }
  0xed   :  { %v118_v27 = vadd.f32 %v117_v26, %v116_v25 }
  0xef   :  { %224 = vlog2.f32 %v118_v27 }
  0xf0   :  { %226 = vrcp.f32 %v59_v9 }
  0xf9   :  { %v225_v39 = vpop.eup %224 }
  0xfa   :  { %v227_v41 = vpop.eup %226  ;;  %v120_v42 = vmul.f32 0.6931472, %v225_v39 }
  0xfb   :  { %v175_v50 = vmul.f32 %v227_v41, %v174_v40 }
  0xfc   :  { %v121_v46 = vadd.f32 %v120_v42, %v108_v17 }
  0xfd   :  { %v176_v59 = vmul.f32 %v175_v50, %v175_v50 }
  0xfe   :  { %v122_v51 = vsub.f32 %v60_v10, %v121_v46 }
  0xff   :  { %v177_v2 = vmul.f32 0.5, %v176_v59 }
 0x100   :  { %v131_v55 = vrot.slane %v122_v51, %v130_v44  ;;  %v141_v56 = vrot.slane %v122_v51, %v140_v47  ;;  %v161_v57 = vrot.slane %v122_v51, %v160_v48  ;;  %v181_v63 = vrot.slane %v122_v51, %v180_v53 }
 0x102   :  { %v132_v60 = vsub.f32 %v131_v55, %v127_v54  ;;  %v142_v61 = vsub.f32 %v141_v56, %v137_v58  ;;  %v162_v1 = vsub.f32 %v161_v57, %v157_v62  ;;  %v182_v6 = vsub.f32 %v181_v63, %v177_v2 }
 0x104   :  { %v143_v0 = vmax.f32 %v132_v60, %v142_v61 }
 0x106   :  { %v144_v3 = vsub.f32 %v132_v60, %v143_v0  ;;  %v148_v4 = vsub.f32 %v142_v61, %v143_v0  ;;  %v163_v5 = vmax.f32 %v143_v0, %v162_v1 }
 0x108   :  { %v145_v7 = vmul.f32 1.442695, %v144_v3  ;;  %v149_v8 = vmul.f32 1.442695, %v148_v4  ;;  %v164_v9 = vsub.f32 %v143_v0, %v163_v5  ;;  %v168_v10 = vsub.f32 %v162_v1, %v163_v5 }
 0x109   :  { %v183_v11 = vmax.f32 %v163_v5, %v182_v6 }
 0x10a   :  { %228 = vpow2.f32 %v145_v7  ;;  %v169_v12 = vmul.f32 1.442695, %v168_v10  ;;  %v165_v13 = vmul.f32 1.442695, %v164_v9 }
 0x10b   :  { %230 = vpow2.f32 %v149_v8  ;;  %v184_v14 = vsub.f32 %v163_v5, %v183_v11  ;;  %v188_v15 = vsub.f32 %v182_v6, %v183_v11 }
 0x10c   :  { %232 = vpow2.f32 %v169_v12 }
 0x10d   :  { %v189_v16 = vmul.f32 1.442695, %v188_v15  ;;  %234 = vpow2.f32 %v165_v13  ;;  %v185_v17 = vmul.f32 1.442695, %v184_v14 }
 0x10f   :  { %236 = vpow2.f32 %v189_v16 }
 0x110   :  { %238 = vpow2.f32 %v185_v17 }
 0x114   :  { %v229_v18 = vpop.eup %228 }
 0x115   :  { %v231_v19 = vpop.eup %230  ;;  %v147_v20 = vmul.f32 %v229_v18, %v219_v32 }
 0x116   :  { %v151_v21 = vmul.f32 %v231_v19, %v221_v34  ;;  %v233_v22 = vpop.eup %232 }
 0x117   :  { %v235_v24 = vpop.eup %234  ;;  %v171_v26 = vmul.f32 %v233_v22, %v223_v37 }
 0x118   :  { %v152_v23 = vadd.f32 %v151_v21, %v147_v20 }
 0x119   :  { %v237_v27 = vpop.eup %236 }
 0x11a   :  { %v167_v25 = vmul.f32 %v235_v24, %v152_v23  ;;  %v239_v29 = vpop.eup %238  ;;  %v191_v31 = vmul.f32 %v237_v27, %v227_v41 }
 0x11c   :  { %v172_v28 = vadd.f32 %v171_v26, %v167_v25 }
 0x11e   :  { %v187_v30 = vmul.f32 %v239_v29, %v172_v28 }
 0x120   :  { %v192_v33 = vadd.f32 %v191_v31, %v187_v30 }
 0x122   :  { %240 = vlog2.f32 %v192_v33 }
 0x12c   :  { %v241_v35 = vpop.eup %240 }
 0x12d   :  { %v194_v36 = vmul.f32 0.6931472, %v241_v35 }
 0x12f   :  { %v195_v38 = vadd.f32 %v194_v36, %v183_v11 }
 0x131   :  { %v197_v39 = vsel %vm196_vm1, %v195_v38, 0.0 }
 0x132   :  { %v198_v40 = vrot.slane %v197_v39, 4 }
 0x134   :  { %v199_v32 = vadd.f32 %v198_v40, %v197_v39 }
 0x136   :  { %v200_v34 = vrot.slane %v199_v32, 2 }
 0x138   :  { %v201_v42 = vadd.f32 %v200_v34, %v199_v32 }
 0x13a   :  { %v202_v43 = vrot.slane %v201_v42, 1 }
 0x13c   :  { %v203_v44 = vadd.f32 %v202_v43, %v201_v42 }
 0x13e   :  { %v204_v37 = vsub.f32 7.351508, %v203_v44 }
 0x140   :  { %206 = vst.msk [vmem:[%s336_s2] sm:$0x1] %vm205_vm2, %v204_v37 }
 0x141   :  { %211 = vsyncpa [#allocation3], 1 }
 0x142   :  { %212 = vsyncpa [#allocation5], 1 }

</bundles_post_ra>
